<compile_context>
chip_gen: v6e
topology: v6e:2x2x1
jax: 0.10.0
libtpu: 0.0.40
codegen_flags: <defaults>
</compile_context>

<pallas_src>
import math

import jax
import jax.numpy as jnp
from jax.experimental import pallas as pl
from jax.experimental.pallas import tpu as pltpu


def _crelu_kernel(x_ref, o_ref):
    """x_ref: (1, tr, lane). o_ref: (1, 2, tr, lane); slab 0 = relu(x), slab 1 = relu(-x)."""
    x = x_ref[...]
    zero = jnp.zeros((), x.dtype)
    o_ref[:, 0, :, :] = jnp.maximum(x, zero)
    o_ref[:, 1, :, :] = jnp.maximum(-x, zero)


def _divisors(n):
    ds = set()
    i = 1
    while i * i <= n:
        if n % i == 0:
            ds.add(i)
            ds.add(n // i)
        i += 1
    return sorted(ds)


def _vmem_budget_and_limit():
    """Generation-aware (working-set budget, scoped-VMEM limit) in bytes."""
    try:
        cap = int(pltpu.get_tpu_info().vmem_capacity_bytes)
    except Exception:
        cap = 64 * 1024 * 1024  # conservative (v7x-sized) fallback
    budget = min(24 * 1024 * 1024, cap // 4)   # 24 MiB on v5e/v6e, 16 MiB on v7x
    limit = min(cap // 2, 2 * budget)          # 48 MiB on v5e/v6e, 32 MiB on v7x
    return budget, limit


def _choose_layout(N, M, itemsize, budget):
    """View each sample's M flat elements as (R, lane); tile R by tr.

    Returns (lane, R, tr) with lane a 128-multiple divisor of M (when one
    exists), tr a sublane-pack-multiple divisor of R, and the double-buffered
    (in + 2 out halves) block under `budget` bytes.
    """
    pack = max(8, 32 // itemsize)  # sublane packing: 8 f32, 16 bf16, 32 int8

    lane_divs = [d for d in _divisors(M) if d % 128 == 0]
    if not lane_divs:
        # TODO(synk): ragged M with no 128-multiple divisor falls back to one
        # full-extent block per sample (correct but masked stores / no R tiling).
        return M, 1, 1

    # Prefer lane in [128, 512] with R a pack-multiple (dense vregs + room to tile R).
    good = [d for d in lane_divs if d <= 512 and (M // d) % pack == 0]
    if good:
        lane = max(good)
    else:
        small = [d for d in lane_divs if d <= 1024]
        lane = max(small) if small else min(lane_divs)
    R = M // lane

    tr_cands = [d for d in _divisors(R) if d % pack == 0]
    if not tr_cands:
        tr_cands = [R]
    per_row = 3 * lane * itemsize * 2  # (x + 2 out slabs) x double buffering, per R-row
    fit = sorted(t for t in tr_cands if t * per_row <= budget) or [min(tr_cands)]

    # Largest tile that still leaves >= 8 grid steps (2 TCs on v7x + pipelining);
    # relax to >= 2 steps, else just take the largest fitting tile.
    tr = fit[-1]
    for target in (8, 2):
        ok = [t for t in fit if N * (R // t) >= target]
        if ok:
            tr = ok[-1]
            break
    return lane, R, tr


def crelu(x):
    """CReLU: concat(relu(x), relu(-x)) along channel dim 1.  x: (N, C, *spatial)."""
    if x.ndim < 2:
        raise ValueError("CReLU needs at least a (N, C) input")
    N, C = x.shape[0], x.shape[1]
    spatial = tuple(x.shape[2:])
    M = C * int(math.prod(spatial))  # math.prod(()) == 1

    budget, vmem_limit = _vmem_budget_and_limit()
    lane, R, tr = _choose_layout(N, M, x.dtype.itemsize, budget)

    x3 = x.reshape(N, R, lane)  # contiguous view of (N, C, *spatial)

    out = pl.pallas_call(
        _crelu_kernel,
        out_shape=jax.ShapeDtypeStruct((N, 2, R, lane), x.dtype),
        grid=(N, R // tr),
        in_specs=[pl.BlockSpec((1, tr, lane), lambda n, r: (n, r, 0))],
        out_specs=pl.BlockSpec((1, 2, tr, lane), lambda n, r: (n, 0, r, 0)),
        compiler_params=pltpu.CompilerParams(
            dimension_semantics=("parallel", "parallel"),
            vmem_limit_bytes=vmem_limit),
    )(x3)
    # (N, 2, R, lane) -> (N, 2C, *spatial): contiguous reshape, no extra HBM pass.
    return out.reshape((N, 2 * C) + spatial)


if __name__ == "__main__":
    key = jax.random.PRNGKey(0)
    x = jax.random.normal(key, (2, 4, 16, 16), jnp.float32)

    fwd = jax.jit(crelu)
    y = jax.block_until_ready(fwd(x))

    # Reference (plain JAX, mirrors torch.cat((F.relu(x), F.relu(-x)), dim=1)).
    ref = jnp.concatenate([jnp.maximum(x, 0.0), jnp.maximum(-x, 0.0)], axis=1)
    assert y.shape == (2, 8, 16, 16)
    assert bool(jnp.all(jnp.isfinite(y)))
    assert bool(jnp.allclose(y, ref))
    print("KERNEL_OK")
</pallas_src>

<mosaic_0001>
module attributes {stable_mosaic.version = 11 : i64} {
  func.func @_crelu_kernel(%arg0: i32, %arg1: i32, %arg2: memref<1x8x128xf32, #tpu.memory_space<vmem>>, %arg3: memref<1x2x8x128xf32, #tpu.memory_space<vmem>>) attributes {dimension_semantics = [#tpu.dimension_semantics<parallel>, #tpu.dimension_semantics<parallel>], iteration_bounds = array<i64: 2, 1>, scalar_prefetch = 0 : i64, scratch_operands = 0 : i64, tpu.core_type = #tpu.core_type<tc>, window_params = [{transform_indices = @transform_0, window_bounds = array<i64: 1, 8, 128>}, {transform_indices = @transform_1, window_bounds = array<i64: 1, 2, 8, 128>}]} {
    %c0 = arith.constant 0 : index
    %c0_0 = arith.constant 0 : index
    %c0_1 = arith.constant 0 : index
    %0 = vector.load %arg2[%c0, %c0_0, %c0_1] : memref<1x8x128xf32, #tpu.memory_space<vmem>>, vector<1x8x128xf32>
    %cst = arith.constant 0.000000e+00 : f32
    %1 = vector.broadcast %cst : f32 to vector<1x8x128xf32>
    %2 = arith.maximumf %0, %1 : vector<1x8x128xf32>
    %c0_2 = arith.constant 0 : index
    %c0_3 = arith.constant 0 : index
    %c0_4 = arith.constant 0 : index
    %c0_5 = arith.constant 0 : index
    %3 = vector.load %arg3[%c0_2, %c0_3, %c0_4, %c0_5] : memref<1x2x8x128xf32, #tpu.memory_space<vmem>>, vector<1x1x8x128xf32>
    %4 = vector.shape_cast %3 : vector<1x1x8x128xf32> to vector<1x8x128xf32>
    %5 = vector.shape_cast %2 : vector<1x8x128xf32> to vector<1x1x8x128xf32>
    tpu.vector_store %arg3[%c0_2, %c0_3, %c0_4, %c0_5], %5 {strides = array<i32>} : memref<1x2x8x128xf32, #tpu.memory_space<vmem>>, vector<1x1x8x128xf32>,
    %cst_6 = arith.constant 0.000000e+00 : f32
    %6 = vector.broadcast %cst_6 : f32 to vector<1x8x128xf32>
    %7 = arith.subf %6, %0 : vector<1x8x128xf32>
    %cst_7 = arith.constant 0.000000e+00 : f32
    %8 = vector.broadcast %cst_7 : f32 to vector<1x8x128xf32>
    %9 = arith.maximumf %7, %8 : vector<1x8x128xf32>
    %c0_8 = arith.constant 0 : index
    %c1 = arith.constant 1 : index
    %c0_9 = arith.constant 0 : index
    %c0_10 = arith.constant 0 : index
    %10 = vector.load %arg3[%c0_8, %c1, %c0_9, %c0_10] : memref<1x2x8x128xf32, #tpu.memory_space<vmem>>, vector<1x1x8x128xf32>
    %11 = vector.shape_cast %10 : vector<1x1x8x128xf32> to vector<1x8x128xf32>
    %12 = vector.shape_cast %9 : vector<1x8x128xf32> to vector<1x1x8x128xf32>
    tpu.vector_store %arg3[%c0_8, %c1, %c0_9, %c0_10], %12 {strides = array<i32>} : memref<1x2x8x128xf32, #tpu.memory_space<vmem>>, vector<1x1x8x128xf32>,
    return
  }
  func.func @transform_0(%arg0: i32, %arg1: i32) -> (i32, i32, i32) {
    %c0_i32 = arith.constant 0 : i32
    %c0_i32_0 = arith.constant 0 : i32
    return %arg0, %arg1, %c0_i32 : i32, i32, i32
  }
  func.func @transform_1(%arg0: i32, %arg1: i32) -> (i32, i32, i32, i32) {
    %c0_i32 = arith.constant 0 : i32
    %c0_i32_0 = arith.constant 0 : i32
    %c0_i32_1 = arith.constant 0 : i32
    return %arg0, %c0_i32, %arg1, %c0_i32_0 : i32, i32, i32, i32
  }
}

</mosaic_0001>

<bundles_post_ra>
// kernel: crelu.1
= control target key start
LH: loop header
LB: loop body
LE: loop exit
PB: predicated region body
PF: predicated region fallthrough
CT: control target
= control target key end

     0   :  { %s302_s6 = smov 0   ;;  %s304_s7 = smov 0   ;;  %s323_s0 = inlined_call_operand.vmem [shape: f32[2,8,128], index: 0, kind: input, shape index: {}]   ;;  %s324_s1 = inlined_call_operand.vmem [shape: f32[2,2,8,128], index: 1, kind: output, shape index: {}]  }
   0x1   :  { %s306_s8 = smov 0  }
   0x2 LB: > { %s23_s9 = sadd.s32 1, %s286_s7  ;;  %p236_p0 = scmp.ge.s32.totalorder %s290_s8, 1  ;;  %s290_s8 = sphi %s306_s8, %s11_s8   ;;  %s286_s7 = sphi %s304_s7, %s326_s7   ;;  %s282_s6 = sphi %s302_s6, %s325_s6  }
   0x3   : > { %p25_p1 = scmp.ge.s32.totalorder %s23_s9, 2  ;;  %p105_p2 = scmp.lt.s32.totalorder %s290_s8, 3 }
   0x5   : > { %s328_s9 = smov (%p25_p1, %s23_s9), 0  ;;  %p106_p3 = pnand %p236_p0, %p105_p2 }
   0x6   : > { %p130_p4 = scmp.lt.s32.totalorder (!%p106_p3), %s282_s6, 1 }
   0x7   : > { %109 = sbr.rel (%p106_p3) target bundleno = 21 (0x15), region = 24 }
   0xc   : > { %s330_s6 = smov (!%p130_p4, %s282_s6), 1 }
   0xd   : > { %s237_s10 = sshll.u32 %s330_s6, 3  ;;  %s243_s11 = sshll.u32 %s330_s6, 4 }
   0xe   : > { %s136_s14 = scalar_lea.vmem %s323_s0, %s237_s10  ;;  %s144_s17 = scalar_lea.vmem %s324_s1, %s243_s11 }
   0xf   : > { %v145_v0 = vld [vmem:[%s136_s14] sm:$0xff] }
  0x10   : > { %v146_v1 = vmax.f32 %v145_v0, 0.0  ;;  %v148_v2 = vsub.f32 0.0, %v145_v0 }
  0x12   : > { %147 = vst [vmem:[%s144_s17] sm:$0xff] %v146_v1  ;;  %v149_v3 = vmax.f32 %v148_v2, 0.0 }
  0x14   : > { %240 = vst [vmem:[%s144_s17 + $0x8] sm:$0xff] %v149_v3 }
  0x15 PF: > { %s11_s8 = sadd.s32 1, %s290_s8   ;;  %s325_s6 = smov %s286_s7 }
  0x16   : > { %p8_p5 = scmp.ge.s32.totalorder %s11_s8, 4   ;;  %s326_s7 = smov %s328_s9 }
  0x18   :  { %10 = sbr.rel (!%p8_p5) target bundleno = 2 (0x2), region = 55 }

</bundles_post_ra>
